<compile_context>
chip_gen: v6e
topology: v6e:2x2x1
jax: 0.10.0
libtpu: 0.0.40
codegen_flags: <defaults>
</compile_context>

<pallas_src>
import functools

import jax
import jax.numpy as jnp
import numpy as np
from jax.experimental import pallas as pl
from jax.experimental.pallas import tpu as pltpu


# ----------------------------- small helpers ---------------------------------

def _lane_shift(arr, off):
    """result[..., p] = arr[..., (p + off) % n]  (circular shift along the lane axis)."""
    n = arr.shape[-1]
    off = off % n
    if off == 0:
        return arr
    return jnp.concatenate([arr[..., off:], arr[..., :off]], axis=-1)


def _tap_masks(H, W):
    """(9, H*W) f32 validity masks for the 3x3 taps (emulates zero padding)."""
    hh = np.arange(H * W) // W
    ww = np.arange(H * W) % W
    m = np.zeros((9, H * W), np.float32)
    for t in range(9):
        dy, dx = t // 3 - 1, t % 3 - 1
        m[t] = ((hh + dy >= 0) & (hh + dy < H) & (ww + dx >= 0) & (ww + dx < W))
    return jnp.asarray(m, np.float32)


# --------------------- pass 1: shrink 1x1 + BN batch stats --------------------

def _shrink_stats_kernel(x_ref, w_ref, sum_ref, sq_ref):
    # x_ref: (1, K*cc, HW) f32   w_ref: (K*c4, K*cc) bf16 (block-diag shrink weight)
    # sum/sq: (K*c4, 1) f32 accumulators; grid axis MUST be "arbitrary" (sequential).
    @pl.when(pl.program_id(0) == 0)
    def _():
        sum_ref[...] = jnp.zeros_like(sum_ref)
        sq_ref[...] = jnp.zeros_like(sq_ref)

    y = jnp.dot(w_ref[...], x_ref[0].astype(jnp.bfloat16),
                preferred_element_type=jnp.float32)          # (K*c4, HW)
    sum_ref[...] += jnp.sum(y, axis=1, keepdims=True)
    sq_ref[...] += jnp.sum(y * y, axis=1, keepdims=True)


# ------------- pass 2: shrink+BN + all three branches, one batch item ---------

def _branch_kernel(x_ref, shrink_ref, scale_ref, shift_ref, mask_ref,
                   hmmov_w_ref, hmmov_b_ref, cls_w_ref, cls_b_ref,
                   wh_w_ref, wh_b_ref, whcls_w_ref, whcls_b_ref,
                   hm_ref, mov_ref, wh_ref,
                   imcol_ref, *, K, c4, W, n_hm):
    bf16 = jnp.bfloat16
    Kc4 = K * c4

    # shrink 1x1 (block-diag over the K frames of this batch item) + folded BN affine
    y = jnp.dot(shrink_ref[...], x_ref[0].astype(bf16),
                preferred_element_type=jnp.float32)          # (K*c4, HW)
    small = y * scale_ref[...] + shift_ref[...]              # BN normalize, f32

    # grouped im2col (rows ordered (tap, k, c4)); zero halo via masked lane shifts.
    masks = mask_ref[...]                                    # (9, HW) f32
    for t in range(9):
        dy, dx = t // 3, t % 3
        off = (dy - 1) * W + (dx - 1)
        slab = _lane_shift(small, off) * masks[t:t + 1, :]
        imcol_ref[t * Kc4:(t + 1) * Kc4, :] = slab.astype(bf16)
    imcol = imcol_ref[...]                                   # (9*K*c4, HW) bf16

    # hm + mov: one K=9*K*c4 conv matmul, ReLU, one fused block-diag classifier matmul.
    feat = jnp.dot(hmmov_w_ref[...], imcol,
                   preferred_element_type=jnp.float32) + hmmov_b_ref[...]
    feat = jnp.maximum(feat, 0.0).astype(bf16)               # (2*head_conv, HW)
    cls = jnp.dot(cls_w_ref[...], feat,
                  preferred_element_type=jnp.float32) + cls_b_ref[...]   # (n_hm+n_mov, HW)
    hm_ref[0] = pl.reciprocal(1.0 + jnp.exp(-cls[:n_hm, :]), approx=True)  # sigmoid (EUP)
    mov_ref[0] = cls[n_hm:, :]

    # wh: per-frame 3x3 conv + ReLU + classifier as block-diag matmuls on the same im2col.
    whf = jnp.dot(wh_w_ref[...], imcol,
                  preferred_element_type=jnp.float32) + wh_b_ref[...]    # (K*whc, HW)
    whf = jnp.maximum(whf, 0.0).astype(bf16)
    wh_ref[0] = jnp.dot(whcls_w_ref[...], whf,
                        preferred_element_type=jnp.float32) + whcls_b_ref[...]


# ----------------------------- parameters -------------------------------------

def init_params(key, input_channel, head_conv, wh_head_conv, branch_info, K):
    c4 = input_channel // 4
    ks = jax.random.split(key, 8)

    def nrm(k, shape, fan_in):
        return jax.random.normal(k, shape, jnp.float32) * (1.0 / np.sqrt(fan_in))

    return dict(
        # shrink: 1x1 conv no bias, BN gamma=1 beta=0
        shrink_w=nrm(ks[0], (input_channel, c4), input_channel),
        bn_gamma=jnp.ones((1, c4), jnp.float32),
        bn_beta=jnp.zeros((1, c4), jnp.float32),
        # hm branch
        hm_w=nrm(ks[1], (9, K * c4, head_conv), 9 * K * c4),
        hm_b=nrm(ks[2], (1, head_conv), 9 * K * c4),
        hmcls_w=nrm(ks[3], (head_conv, branch_info["hm"]), head_conv),
        hmcls_b=jnp.full((1, branch_info["hm"]), -2.19, jnp.float32),
        # mov branch (fill_fc_weights -> biases 0)
        mov_w=nrm(ks[4], (9, K * c4, head_conv), 9 * K * c4),
        mov_b=jnp.zeros((1, head_conv), jnp.float32),
        movcls_w=nrm(ks[5], (head_conv, branch_info["mov"]), head_conv),
        movcls_b=jnp.zeros((1, branch_info["mov"]), jnp.float32),
        # wh branch (fill_fc_weights -> biases 0)
        wh1_w=nrm(ks[6], (9, c4, wh_head_conv), 9 * c4),
        wh1_b=jnp.zeros((1, wh_head_conv), jnp.float32),
        wh2_w=nrm(ks[7], (wh_head_conv, branch_info["wh"] // K), wh_head_conv),
        wh2_b=jnp.zeros((1, branch_info["wh"] // K), jnp.float32),
    )


# ----------------------------- forward (wrapper) ------------------------------

def moc_branch_forward(x_nchw, params, K, head_conv, wh_head_conv, branch_info):
    bbK, cc, H, W = x_nchw.shape
    B = bbK // K
    c4 = cc // 4
    HW = H * W
    n_hm, n_mov = branch_info["hm"], branch_info["mov"]
    wh_per = branch_info["wh"] // K
    bf16, f32 = jnp.bfloat16, jnp.float32

    # NCHW -> (B, K*cc, H*W): a pure reshape (no transpose, no cast pass).
    x_r = x_nchw.reshape(B, K * cc, HW)

    # ---- trace-time weight packing (tiny tensors; constant-folded under jit) ----
    eyeK = jnp.eye(K, dtype=f32)
    # block-diag shrink (K*c4, K*cc): grouped channel order = k*c4 + c
    shrink_blk = jnp.kron(eyeK, params["shrink_w"].T).astype(bf16)

    # hm/mov 3x3 weights concatenated along Cout, flattened to (2*hc, 9*K*c4)
    hm_wf = params["hm_w"].transpose(2, 0, 1).reshape(head_conv, 9 * K * c4)
    mov_wf = params["mov_w"].transpose(2, 0, 1).reshape(head_conv, 9 * K * c4)
    hmmov_w = jnp.concatenate([hm_wf, mov_wf], axis=0).astype(bf16)
    hmmov_b = jnp.concatenate([params["hm_b"].reshape(-1, 1),
                               params["mov_b"].reshape(-1, 1)], axis=0)

    # single block-diagonal 1x1 classifier (n_hm + n_mov, 2*head_conv)
    cls_w = jnp.concatenate([
        jnp.concatenate([params["hmcls_w"].T,
                         jnp.zeros((n_hm, head_conv), f32)], axis=1),
        jnp.concatenate([jnp.zeros((n_mov, head_conv), f32),
                         params["movcls_w"].T], axis=1)], axis=0).astype(bf16)
    cls_b = jnp.concatenate([params["hmcls_b"].reshape(-1, 1),
                             params["movcls_b"].reshape(-1, 1)], axis=0)

    # wh branch as block-diagonal (per-frame) matmuls on the shared grouped im2col
    wh_wf = params["wh1_w"].transpose(2, 0, 1).reshape(wh_head_conv, 9, c4)
    wh_w = jnp.einsum("kK,otc->kotKc", eyeK, wh_wf).reshape(
        K * wh_head_conv, 9 * K * c4).astype(bf16)
    wh_b = jnp.tile(params["wh1_b"].reshape(1, -1), (K, 1)).reshape(-1, 1)
    whcls_w = jnp.kron(eyeK, params["wh2_w"].T).astype(bf16)
    whcls_b = jnp.tile(params["wh2_b"].reshape(1, -1), (K, 1)).reshape(-1, 1)

    masks = _tap_masks(H, W)

    # ---- pass 1: shrink 1x1 + BN batch statistics ("arbitrary" accumulator grid) ----
    gsum, gsq = pl.pallas_call(
        _shrink_stats_kernel,
        out_shape=(jax.ShapeDtypeStruct((K * c4, 1), f32),
                   jax.ShapeDtypeStruct((K * c4, 1), f32)),
        grid=(B,),
        in_specs=[pl.BlockSpec((1, K * cc, HW), lambda b: (b, 0, 0)),
                  pl.BlockSpec((K * c4, K * cc), lambda b: (0, 0))],
        out_specs=(pl.BlockSpec((K * c4, 1), lambda b: (0, 0)),
                   pl.BlockSpec((K * c4, 1), lambda b: (0, 0))),
        compiler_params=pltpu.CompilerParams(dimension_semantics=("arbitrary",)),
    )(x_r, shrink_blk)

    # fold BN into a per-grouped-channel affine (tiny scalar math, no HBM pass)
    m_total = float(bbK * HW)
    mean = gsum.reshape(K, c4).sum(axis=0) / m_total
    msq = gsq.reshape(K, c4).sum(axis=0) / m_total
    # TODO(synk): E[y^2]-E[y]^2 cancels badly if |mean| >> std; fine for these inputs.
    var = msq - mean * mean
    scale_c = params["bn_gamma"].reshape(-1) * jax.lax.rsqrt(var + 1e-5)
    shift_c = params["bn_beta"].reshape(-1) - mean * scale_c
    scale_g = jnp.tile(scale_c, (K,)).reshape(K * c4, 1)
    shift_g = jnp.tile(shift_c, (K,)).reshape(K * c4, 1)

    # ---- pass 2: all branches fused, one grid step per batch item -------------------
    kernel = functools.partial(_branch_kernel, K=K, c4=c4, W=W, n_hm=n_hm)
    hm, mov, wh = pl.pallas_call(
        kernel,
        out_shape=(jax.ShapeDtypeStruct((B, n_hm, HW), f32),
                   jax.ShapeDtypeStruct((B, n_mov, HW), f32),
                   jax.ShapeDtypeStruct((B, K * wh_per, HW), f32)),
        grid=(B,),
        in_specs=[
            pl.BlockSpec((1, K * cc, HW), lambda b: (b, 0, 0)),
            pl.BlockSpec(shrink_blk.shape, lambda b: (0, 0)),
            pl.BlockSpec(scale_g.shape, lambda b: (0, 0)),
            pl.BlockSpec(shift_g.shape, lambda b: (0, 0)),
            pl.BlockSpec(masks.shape, lambda b: (0, 0)),
            pl.BlockSpec(hmmov_w.shape, lambda b: (0, 0)),
            pl.BlockSpec(hmmov_b.shape, lambda b: (0, 0)),
            pl.BlockSpec(cls_w.shape, lambda b: (0, 0)),
            pl.BlockSpec(cls_b.shape, lambda b: (0, 0)),
            pl.BlockSpec(wh_w.shape, lambda b: (0, 0)),
            pl.BlockSpec(wh_b.shape, lambda b: (0, 0)),
            pl.BlockSpec(whcls_w.shape, lambda b: (0, 0)),
            pl.BlockSpec(whcls_b.shape, lambda b: (0, 0)),
        ],
        out_specs=(pl.BlockSpec((1, n_hm, HW), lambda b: (b, 0, 0)),
                   pl.BlockSpec((1, n_mov, HW), lambda b: (b, 0, 0)),
                   pl.BlockSpec((1, K * wh_per, HW), lambda b: (b, 0, 0))),
        scratch_shapes=[pltpu.VMEM((9 * K * c4, HW), jnp.bfloat16)],
        compiler_params=pltpu.CompilerParams(dimension_semantics=("parallel",)),
    )(x_r, shrink_blk, scale_g, shift_g, masks,
      hmmov_w, hmmov_b, cls_w, cls_b, wh_w, wh_b, whcls_w, whcls_b)

    # outputs are already NCHW-flattened and lane-dense -> only free reshapes remain
    return {
        "hm": hm.reshape(B, n_hm, H, W),
        "mov": mov.reshape(B, n_mov, H, W),
        "wh": wh.reshape(B, K * wh_per, H, W),
    }


# ----------------------------- pure-JAX reference -----------------------------

def reference_forward(x_nchw, params, K, head_conv, wh_head_conv, branch_info):
    hp = jax.lax.Precision.HIGHEST
    bbK, cc, H, W = x_nchw.shape
    B = bbK // K
    c4 = cc // 4
    x = jnp.transpose(x_nchw, (0, 2, 3, 1)).astype(jnp.float32)

    y = jnp.einsum("nhwc,cd->nhwd", x, params["shrink_w"], precision=hp)
    yf = y.reshape(-1, c4)
    mean = yf.mean(axis=0)
    var = ((yf - mean) ** 2).mean(axis=0)
    small = (y - mean) / jnp.sqrt(var + 1e-5) * params["bn_gamma"][0] + params["bn_beta"][0]

    def conv3(xin, w, b):
        xp = jnp.pad(xin, ((0, 0), (1, 1), (1, 1), (0, 0)))
        Hh, Ww = xin.shape[1], xin.shape[2]
        out = jnp.zeros(xin.shape[:3] + (w.shape[2],), jnp.float32) + b[0]
        for dy in range(3):
            for dx in range(3):
                out = out + jnp.einsum("nhwc,cd->nhwd",
                                       xp[:, dy:dy + Hh, dx:dx + Ww, :],
                                       w[dy * 3 + dx], precision=hp)
        return jnp.maximum(out, 0.0)

    grouped = small.reshape(B, K, H, W, c4).transpose(0, 2, 3, 1, 4).reshape(B, H, W, K * c4)
    hm_feat = conv3(grouped, params["hm_w"], params["hm_b"])
    hm = jax.nn.sigmoid(jnp.einsum("nhwc,cd->nhwd", hm_feat, params["hmcls_w"],
                                   precision=hp) + params["hmcls_b"][0])
    mov_feat = conv3(grouped, params["mov_w"], params["mov_b"])
    mov = jnp.einsum("nhwc,cd->nhwd", mov_feat, params["movcls_w"],
                     precision=hp) + params["movcls_b"][0]
    wh_feat = conv3(small, params["wh1_w"], params["wh1_b"])
    wh = jnp.einsum("nhwc,cd->nhwd", wh_feat, params["wh2_w"],
                    precision=hp) + params["wh2_b"][0]
    wh_per = branch_info["wh"] // K
    return {
        "hm": jnp.transpose(hm, (0, 3, 1, 2)),
        "mov": jnp.transpose(mov, (0, 3, 1, 2)),
        "wh": jnp.transpose(wh, (0, 3, 1, 2)).reshape(B, K * wh_per, H, W),
    }


# ----------------------------- main --------------------------------------------

if __name__ == "__main__":
    # TODO(synk): vis_feat (matplotlib visualization) is not part of the forward pass
    # and is intentionally not implemented.
    B, K = 2, 4
    input_channel = 16
    head_conv = 32
    arch = "dla_34"
    wh_head_conv = 64 if arch in ("resnet", "mobile_v2", "shuffle_v2") else head_conv
    branch_info = {"hm": 3, "mov": 2 * K, "wh": 2 * K}
    H = W = 16

    key = jax.random.PRNGKey(0)
    kx, kp = jax.random.split(key)
    x = jax.random.normal(kx, (B * K, input_channel, H, W), jnp.float32)  # NCHW like PyTorch
    params = init_params(kp, input_channel, head_conv, wh_head_conv, branch_info, K)

    out = moc_branch_forward(x, params, K, head_conv, wh_head_conv, branch_info)
    out = jax.tree_util.tree_map(jax.block_until_ready, out)

    ref = reference_forward(x, params, K, head_conv, wh_head_conv, branch_info)
    for name in ("hm", "mov", "wh"):
        assert out[name].shape == ref[name].shape, (name, out[name].shape, ref[name].shape)
        # bf16 matmul operands (f32 accumulation) vs a full-f32 reference.
        np.testing.assert_allclose(np.asarray(out[name]), np.asarray(ref[name]),
                                   rtol=2e-2, atol=2e-2)

    print("KERNEL_OK")
</pallas_src>

<mosaic_0001>
module attributes {stable_mosaic.version = 11 : i64} {
  func.func @_shrink_stats_kernel(%arg0: i32, %arg1: memref<1x64x256xf32, #tpu.memory_space<vmem>>, %arg2: memref<16x64xbf16, #tpu.memory_space<vmem>>, %arg3: memref<16x1xf32, #tpu.memory_space<vmem>>, %arg4: memref<16x1xf32, #tpu.memory_space<vmem>>) attributes {dimension_semantics = [#tpu.dimension_semantics<arbitrary>], iteration_bounds = array<i64: 2>, scalar_prefetch = 0 : i64, scratch_operands = 0 : i64, tpu.core_type = #tpu.core_type<tc>, window_params = [{transform_indices = @transform_0, window_bounds = array<i64: 1, 64, 256>}, {pipeline_mode = #tpu.pipeline_mode<synchronous>, transform_indices = @transform_1, window_bounds = array<i64: 16, 64>}, {pipeline_mode = #tpu.pipeline_mode<synchronous>, transform_indices = @transform_2, window_bounds = array<i64: 16, 1>}, {pipeline_mode = #tpu.pipeline_mode<synchronous>, transform_indices = @transform_3, window_bounds = array<i64: 16, 1>}]} {
    %c0_i32 = arith.constant 0 : i32
    %0 = arith.cmpi eq, %arg0, %c0_i32 : i32
    %1 = arith.extui %0 : i1 to i32
    %c0_i32_0 = arith.constant 0 : i32
    %2 = arith.cmpi ne, %1, %c0_i32_0 : i32
    scf.if %2 {
      %cst_15 = arith.constant 0.000000e+00 : f32
      %19 = vector.broadcast %cst_15 : f32 to vector<16x1xf32>
      %c0_16 = arith.constant 0 : index
      %c0_17 = arith.constant 0 : index
      %20 = vector.load %arg3[%c0_16, %c0_17] : memref<16x1xf32, #tpu.memory_space<vmem>>, vector<16x1xf32>
      tpu.vector_store %arg3[%c0_16, %c0_17], %19 {strides = array<i32>} : memref<16x1xf32, #tpu.memory_space<vmem>>, vector<16x1xf32>,
      %cst_18 = arith.constant 0.000000e+00 : f32
      %21 = vector.broadcast %cst_18 : f32 to vector<16x1xf32>
      %c0_19 = arith.constant 0 : index
      %c0_20 = arith.constant 0 : index
      %22 = vector.load %arg4[%c0_19, %c0_20] : memref<16x1xf32, #tpu.memory_space<vmem>>, vector<16x1xf32>
      tpu.vector_store %arg4[%c0_19, %c0_20], %21 {strides = array<i32>} : memref<16x1xf32, #tpu.memory_space<vmem>>, vector<16x1xf32>,
    } else {
    }
    %c0 = arith.constant 0 : index
    %c0_1 = arith.constant 0 : index
    %3 = vector.load %arg2[%c0, %c0_1] : memref<16x64xbf16, #tpu.memory_space<vmem>>, vector<16x64xbf16>
    %c0_2 = arith.constant 0 : index
    %c0_3 = arith.constant 0 : index
    %c0_4 = arith.constant 0 : index
    %4 = vector.load %arg1[%c0_2, %c0_3, %c0_4] : memref<1x64x256xf32, #tpu.memory_space<vmem>>, vector<1x64x256xf32>
    %5 = vector.shape_cast %4 : vector<1x64x256xf32> to vector<64x256xf32>
    %6 = arith.truncf %5 : vector<64x256xf32> to vector<64x256xbf16>
    %cst = arith.constant dense<0.000000e+00> : vector<16x256xf32>
    %7 = tpu.matmul %3, %6, %cst {dimension_numbers = #tpu.dot_dimension_numbers<[1], [0], [0], [1], [0, 0, 1, 1], [], []>} : vector<16x64xbf16>, vector<64x256xbf16>, vector<16x256xf32> -> vector<16x256xf32>
    %c0_5 = arith.constant 0 : index
    %c0_6 = arith.constant 0 : index
    %8 = vector.load %arg3[%c0_5, %c0_6] : memref<16x1xf32, #tpu.memory_space<vmem>>, vector<16x1xf32>
    %cst_7 = arith.constant dense<0.000000e+00> : vector<16xf32>
    %9 = vector.multi_reduction <add>, %7, %cst_7 [1] : vector<16x256xf32> to vector<16xf32>
    %10 = vector.shape_cast %9 : vector<16xf32> to vector<16x1xf32>
    %11 = arith.addf %8, %10 : vector<16x1xf32>
    %c0_8 = arith.constant 0 : index
    %c0_9 = arith.constant 0 : index
    %12 = vector.load %arg3[%c0_8, %c0_9] : memref<16x1xf32, #tpu.memory_space<vmem>>, vector<16x1xf32>
    tpu.vector_store %arg3[%c0_8, %c0_9], %11 {strides = array<i32>} : memref<16x1xf32, #tpu.memory_space<vmem>>, vector<16x1xf32>,
    %c0_10 = arith.constant 0 : index
    %c0_11 = arith.constant 0 : index
    %13 = vector.load %arg4[%c0_10, %c0_11] : memref<16x1xf32, #tpu.memory_space<vmem>>, vector<16x1xf32>
    %14 = arith.mulf %7, %7 : vector<16x256xf32>
    %cst_12 = arith.constant dense<0.000000e+00> : vector<16xf32>
    %15 = vector.multi_reduction <add>, %14, %cst_12 [1] : vector<16x256xf32> to vector<16xf32>
    %16 = vector.shape_cast %15 : vector<16xf32> to vector<16x1xf32>
    %17 = arith.addf %13, %16 : vector<16x1xf32>
    %c0_13 = arith.constant 0 : index
    %c0_14 = arith.constant 0 : index
    %18 = vector.load %arg4[%c0_13, %c0_14] : memref<16x1xf32, #tpu.memory_space<vmem>>, vector<16x1xf32>
    tpu.vector_store %arg4[%c0_13, %c0_14], %17 {strides = array<i32>} : memref<16x1xf32, #tpu.memory_space<vmem>>, vector<16x1xf32>,
    return
  }
  func.func @transform_0(%arg0: i32) -> (i32, i32, i32) {
    %c0_i32 = arith.constant 0 : i32
    %c0_i32_0 = arith.constant 0 : i32
    %c0_i32_1 = arith.constant 0 : i32
    return %arg0, %c0_i32, %c0_i32_0 : i32, i32, i32
  }
  func.func @transform_1(%arg0: i32) -> (i32, i32) {
    %c0_i32 = arith.constant 0 : i32
    %c0_i32_0 = arith.constant 0 : i32
    %c0_i32_1 = arith.constant 0 : i32
    return %c0_i32, %c0_i32_0 : i32, i32
  }
  func.func @transform_2(%arg0: i32) -> (i32, i32) {
    %c0_i32 = arith.constant 0 : i32
    %c0_i32_0 = arith.constant 0 : i32
    %c0_i32_1 = arith.constant 0 : i32
    return %c0_i32, %c0_i32_0 : i32, i32
  }
  func.func @transform_3(%arg0: i32) -> (i32, i32) {
    %c0_i32 = arith.constant 0 : i32
    %c0_i32_0 = arith.constant 0 : i32
    %c0_i32_1 = arith.constant 0 : i32
    return %c0_i32, %c0_i32_0 : i32, i32
  }
}

</mosaic_0001>

<bundles_post_ra>
// kernel: tpu_custom_call.1
= control target key start
LH: loop header
LB: loop body
LE: loop exit
PB: predicated region body
PF: predicated region fallthrough
CT: control target
= control target key end

     0   :  { %9 = vsyncpa [#allocation3], 0  ;;  %s738_s0 = inlined_call_operand.hbm [shape: f32[2,64,256], index: 0, kind: input, shape index: {}]   ;;  %s739_s1 = inlined_call_operand.hbm [shape: bf16[16,64], index: 1, kind: input, shape index: {}]   ;;  %s740_s2 = inlined_call_operand.vmem [shape: f32[16,1], index: 2, kind: output, shape index: {0}]   ;;  %s741_s3 = inlined_call_operand.vmem [shape: f32[16,1], index: 3, kind: output, shape index: {1}]  }
   0x1   :  { %11 = vsyncpa [#allocation3 + $0x1], 0 }
   0x2   :  { %12 = vsyncpa [#allocation5], 0  ;;  %s556_s12 = smov 0   ;;  %s558_s13 = smov 0  }
   0x3   :  { %s560_s14 = smov 0   ;;  %s562_s15 = smov 0  }
   0x4 LB: > { %s361_s16 = sadd.s32 4294967295, %s526_s15   ;;  %p38_p0 = scmp.ne.s32.totalorder %s518_s13, %s514_s12  ;;  %s526_s15 = sphi %s562_s15, %s759_s15   ;;  %s522_s14 = sphi %s560_s14, %s758_s14   ;;  %s518_s13 = sphi %s558_s13, %s757_s13   ;;  %s514_s12 = sphi %s556_s12, %s756_s12  }
   0x5   : > { %p576_p1 = scmp.eq.s32.totalorder %s361_s16, 0  ;;  %p362_p2 = scmp.ge.s32.totalorder %s526_s15, 1 }
   0x6   : > { %p112_p3 = scmp.lt.s32.totalorder %s526_s15, 3  ;;  %p582_p4 = scmp.ne.s32.totalorder %s361_s16, 0 }
   0x7   : > { %s746_s17 = scalar_select %p576_p1, 1, 0 }
   0x8   : > { %s747_s18 = scalar_select %p582_p4, 1, 0 }
   0x9   : > { %p588_p5 = por %p576_p1, %p38_p0  ;;  %p592_p6 = pnand %p362_p2, %p112_p3 }
   0xa   : > { %s528_s21 = smov [#allocation4]   ;;  %s605_s24 = sadd.s32 1, %s526_s15  }
   0xb   : > { %s748_s19 = scalar_select %p588_p5, 1, 0 }
   0xc   : > { %s749_s20 = scalar_select %p592_p6, 1, 0 }
   0xd   : > { %s124_s22 = sshll.u32 %s528_s21, 4  ;;  %p383_p7 = pneg %p592_p6  ;;  %s125_s22 = int_to_ptr.vmem [resolvable:$true] %s124_s22 }
   0xe   : > { %s25_s25 = sadd.s32 1, %s522_s14  ;;  %s22_s26 = ssub.s32 %s526_s15, %s605_s24 }
   0xf   : > { %p600_p8 = pnand %p383_p7, %p576_p1  ;;  %s445_s27 = scalar_lea.vmem %s125_s22, 128 }
  0x10   : > { %p446_p10 = scmp.ne.s32.totalorder %s125_s22, %s445_s27  ;;  %p453_p13 = scmp.lt.s32.totalorder %s125_s22, %s125_s22 }
  0x11   : > { %p436_p9 = pneg %p600_p8  ;;  %p454_p0 = scmp.lt.s32.totalorder %s445_s27, %s445_s27 }
  0x13   : > { %p448_p11 = pnand %p446_p10, %p436_p9  ;;  %p455_p2 = por %p454_p0, %p453_p13 }
  0x15   : > { %p449_p12 = pneg %p448_p11 }
  0x17   : > { %p456_p3 = pnand %p455_p2, %p449_p12 }
  0x19   : > { %459 = shalt.err (!%p456_p3)
}
  0x1a   : > { %s529_s28 = smov 64   ;;  %s530_s29 = smov 4  }
  0x1b   : > { %386 = dma.hbm_to_vmem [thread:$0]  (!%p600_p8), %s739_s1, 128, %s125_s22, [#allocation5], %s529_s28, %s529_s28, %s530_s29  }
  0x1c   : > { %p23_p7 = scmp.eq.s32.totalorder %s22_s26, 0  ;;  %p32_p9 = scmp.ne.s32.totalorder %s522_s14, %s518_s13 }
  0x1d   : > { %p33_p10 = scmp.eq.s32.totalorder %s526_s15, 0  ;;  %p392_p11 = scmp.lt.s32.totalorder %s526_s15, 2 }
  0x1e   : > { %s622_s5 = scalar_select %p23_p7, %s522_s14, %s25_s25  }
  0x1f   : > { %p34_p12 = por %p33_p10, %p32_p9  ;;  %s138_s6 = sand.u32 1, %s522_s14  }
  0x20   : > { %s365_s7 = sshll.u32 %s138_s6, 7  ;;  %s376_s8 = sshll.u32 %s526_s15, 11 }
  0x21   : > { %s629_s11 = scalar_lea.hbm %s738_s0, %s376_s8  ;;  %s142_s12 = scalar_lea.vmem [#allocation2], %s365_s7 }
  0x22   : > { %s149_s16 = sshll.u32 %s142_s12, 4  ;;  %p633_p8 = pnand %p392_p11, %p34_p12  ;;  %s631_s16 = int_to_ptr.vmem [resolvable:$true] %s149_s16 }
  0x23   : > { %s637_s22 = scalar_lea.sflag [#allocation3], %s138_s6  ;;  %s460_s15 = scalar_lea.hbm %s629_s11, 2048 }
  0x24   : > { %p461_p13 = scmp.ne.s32.totalorder %s629_s11, %s460_s15  ;;  %p462_p0 = pneg %p633_p8 }
  0x25   : > { %s465_s26 = scalar_lea.hbm %s738_s0, 4096  ;;  %p466_p7 = scmp.lt.s32.totalorder %s629_s11, %s738_s0 }
  0x26   : > { %p463_p2 = pnand %p462_p0, %p461_p13  ;;  %p467_p9 = scmp.lt.s32.totalorder %s465_s26, %s460_s15 }
  0x28   : > { %p464_p3 = pneg %p463_p2  ;;  %p468_p10 = por %p467_p9, %p466_p7 }
  0x2a   : > { %p469_p11 = pnand %p468_p10, %p464_p3 }
  0x2c   : > { %472 = shalt.err (!%p469_p11)
}
  0x2d   : > { %s473_s29 = scalar_lea.vmem %s631_s16, 2048  ;;  %s531_s30 = smov [#allocation2]  }
  0x2e   : > { %p474_p12 = scmp.ne.s32.totalorder %s631_s16, %s473_s29  ;;  %s478_s4 = sshll.u32 %s531_s30, 4  ;;  %s479_s4 = int_to_ptr.vmem [resolvable:$false] %s478_s4 }
  0x2f   : > { %s480_s6 = scalar_lea.vmem %s479_s4, 4096  ;;  %p481_p2 = scmp.lt.s32.totalorder %s631_s16, %s479_s4 }
  0x30   : > { %p476_p4 = pnand %p474_p12, %p462_p0  ;;  %p482_p1 = scmp.lt.s32.totalorder %s480_s6, %s473_s29 }
  0x32   : > { %p477_p13 = pneg %p476_p4  ;;  %p483_p5 = por %p482_p1, %p481_p2 }
  0x34   : > { %p484_p6 = pnand %p483_p5, %p477_p13 }
  0x36   : > { %487 = shalt.err (!%p484_p6)
}
  0x37   : > { %s532_s7 = smov 256   ;;  %s533_s8 = smov 16  }
  0x38   : > { %390 = dma.hbm_to_vmem [thread:$0]  (!%p633_p8), %s629_s11, 2048, %s631_s16, %s637_s22, %s532_s7, %s532_s7, %s533_s8  }
  0x39   : > { %p752_p0 = scmp.ne.s32.totalorder %s749_s20, 0 }
  0x3a   : > { %s163_s9 = sand.u32 (!%p752_p0), 1, %s518_s13   ;;  %p753_p1 = scmp.ne.s32.totalorder (!%p752_p0), %s748_s19, 0 }
  0x3b   : > { %161 = sbr.rel (%p752_p0) target bundleno = 441 (0x1b9), region = 28  ;;  %s369_s10 = sshll.u32 (!%p752_p0), %s163_s9, 7 }
  0x3c   : > { %s164_s12 = scalar_lea.sflag (!%p752_p0), [#allocation3], %s163_s9  ;;  %s661_s15 = scalar_lea.vmem (!%p752_p0), [#allocation2], %s369_s10 }
  0x40   : > { %505 = dma.done.wait (%p753_p1), %s164_s12, 2048  }
  0x41   : > { %507 = vsyncadd (%p753_p1), %s164_s12, 4294965248  ;;  %p754_p4 = scmp.ne.s32.totalorder %s746_s17, 0 }
  0x43   : > { %509 = dma.done.wait (%p754_p4), [#allocation5], 128  }
  0x44   : > { %511 = vsyncadd (%p754_p4), [#allocation5], 4294967168  ;;  %p755_p5 = scmp.ne.s32.totalorder %s747_s18, 0 }
  0x46   : > { %193 = sbr.rel (%p755_p5) target bundleno = 78 (0x4e), region = 40 }
  0x4b   : > { %vm194_vm0 = vcmask 7168   ;;  %v534_v0 = vmov 0.0  }
  0x4c   : > { %195 = vst.msk [vmem:[%s740_s2] sm:$0xff] %vm194_vm0, %v534_v0  ;;  %196 = vst.msk [vmem:[%s740_s2 + $0x8] sm:$0xff] %vm194_vm0, %v534_v0 }
  0x4d   : > { %197 = vst.msk [vmem:[%s741_s3] sm:$0xff] %vm194_vm0, %v534_v0  ;;  %198 = vst.msk [vmem:[%s741_s3 + $0x8] sm:$0xff] %vm194_vm0, %v534_v0 }
  0x4e PF: > { %v214_v1 = vld [vmem:[%s661_s15 + $0x68] sm:$0xff]  ;;  %v216_v2 = vld [vmem:[%s661_s15 + $0x78] sm:$0xff]  ;;  %v213_v3 = vld [vmem:[%s661_s15 + $0x60] sm:$0xff]  ;;  %v535_v8 = vmov 0   ;;  %vm230_vm1 = vcmask 523264   ;;  %vm287_vm2 = vcmask 7168  }
  0x4f   : > { %v224_v4 = vpack.c.bf16 %v216_v2, %v214_v1  ;;  %v215_v5 = vld [vmem:[%s661_s15 + $0x70] sm:$0xff]  ;;  %v210_v6 = vld [vmem:[%s661_s15 + $0x48] sm:$0xff]  ;;  %v212_v7 = vld [vmem:[%s661_s15 + $0x58] sm:$0xff]  ;;  %266 = vmatprep.mubr.bf16.mxu0 %v535_v8 }
  0x50   : > { %v223_v9 = vpack.c.bf16 %v215_v5, %v213_v3  ;;  %v222_v10 = vpack.c.bf16 %v212_v7, %v210_v6  ;;  %v209_v11 = vld [vmem:[%s661_s15 + $0x40] sm:$0xff]  ;;  %v211_v12 = vld [vmem:[%s661_s15 + $0x50] sm:$0xff]  ;;  %v206_v13 = vld [vmem:[%s661_s15 + $0x28] sm:$0xff] }
  0x51   : > { %242 = vmatprep.subr.bf16.mxu0 %v224_v4  ;;  %v208_v14 = vld [vmem:[%s661_s15 + $0x38] sm:$0xff]  ;;  %v221_v15 = vpack.c.bf16 %v211_v12, %v209_v11  ;;  %v205_v16 = vld [vmem:[%s661_s15 + $0x20] sm:$0xff]  ;;  %v207_v18 = vld [vmem:[%s661_s15 + $0x30] sm:$0xff] }
  0x52   : > { %243 = vmatpush1.bf16.msra.mxu0 %v223_v9  ;;  %v220_v17 = vpack.c.bf16 %v208_v14, %v206_v13  ;;  %v202_v19 = vld [vmem:[%s661_s15 + $0x8] sm:$0xff]  ;;  %v204_v20 = vld [vmem:[%s661_s15 + $0x18] sm:$0xff]  ;;  %v219_v21 = vpack.c.bf16 %v207_v18, %v205_v16  ;;  %v201_v23 = vld [vmem:[%s661_s15] sm:$0xff] }
  0x53   : > { %244 = vmatprep.subr.bf16.mxu0 %v222_v10  ;;  %v218_v22 = vpack.c.bf16 %v204_v20, %v202_v19  ;;  %v203_v24 = vld [vmem:[%s661_s15 + $0x10] sm:$0xff]  ;;  %v433_v26 = vld [vmem:[#allocation4] sm:$0xff]   ;;  %v278_v44 = vld [vmem:[%s740_s2 + $0x8] sm:$0xff] }
  0x54   : > { %v217_v25 = vpack.c.bf16 %v203_v24, %v201_v23  ;;  %v277_v39 = vld [vmem:[%s740_s2] sm:$0xff]  ;;  %v291_v47 = vld [vmem:[%s741_s3 + $0x8] sm:$0xff] }
  0x55   : > { %v290_v41 = vld [vmem:[%s741_s3] sm:$0xff] }
  0x56   : > { %245 = vmatpush1.bf16.msra.mxu0 %v221_v15 }
  0x57   : > { %246 = vmatprep.subr.bf16.mxu0 %v220_v17 }
  0x5a   : > { %247 = vmatpush1.bf16.msra.mxu0 %v219_v21 }
  0x5b   : > { %248 = vmatprep.subr.bf16.mxu0 %v218_v22 }
  0x5e   : > { %249 = vmatpush1.bf16.msra.mxu0 %v217_v25 }
  0x61   : > { %373 = vmatmul.mubr.msk.bf16.vlgmr.msra.gmra.mxu0 %vm230_vm1, %v433_v26 }
 0x121   : > { %v268_v27 = vpop.f32.mrf.mxu0 }
 0x122   : > { %v292_v29 = vmul.f32 %v268_v27, %v268_v27 }
 0x123   : > { %v270_v28 = vpop.f32.mrf.mxu0 }
 0x124   : > { %v293_v30 = vmul.f32 %v270_v28, %v270_v28  ;;  %v279_v31 = vadd.f32 %v270_v28, %v268_v27 }
 0x125   : > { %v272_v32 = vpop.f32.mrf.mxu0 }
 0x126   : > { %280 = vadd.xlane.f32.xlu0 %v279_v31  ;;  %v296_v33 = vadd.f32 %v293_v30, %v292_v29  ;;  %v294_v35 = vmul.f32 %v272_v32, %v272_v32 }
 0x127   : > { %v274_v34 = vpop.f32.mrf.mxu0 }
 0x128   : > { %v282_v36 = vadd.f32 %v274_v34, %v272_v32  ;;  %v295_v37 = vmul.f32 %v274_v34, %v274_v34  ;;  %297 = vadd.xlane.f32.xlu1 %v296_v33 }
 0x12a   : > { %283 = vadd.xlane.f32.xlu0 %v282_v36  ;;  %v299_v38 = vadd.f32 %v295_v37, %v294_v35 }
 0x12c   : > { %300 = vadd.xlane.f32.xlu1 %v299_v38 }
 0x1af   : > { %v281_v40 = vpop.xlane.xlu0 %280 }
 0x1b0   : > { %v285_v42 = vadd.f32 %v281_v40, %v277_v39 }
 0x1b1   : > { %v298_v43 = vpop.xlane.xlu1 %297 }
 0x1b2   : > { %288 = vst.msk [vmem:[%s740_s2] sm:$0xff] %vm287_vm2, %v285_v42  ;;  %v302_v45 = vadd.f32 %v298_v43, %v290_v41 }
 0x1b3   : > { %v284_v46 = vpop.xlane.xlu0 %283 }
 0x1b4   : > { %304 = vst.msk [vmem:[%s741_s3] sm:$0xff] %vm287_vm2, %v302_v45  ;;  %v286_v48 = vadd.f32 %v284_v46, %v278_v44 }
 0x1b5   : > { %v301_v49 = vpop.xlane.xlu1 %300 }
 0x1b6   : > { %289 = vst.msk [vmem:[%s740_s2 + $0x8] sm:$0xff] %vm287_vm2, %v286_v48  ;;  %v303_v50 = vadd.f32 %v301_v49, %v291_v47 }
 0x1b8   : > { %305 = vst.msk [vmem:[%s741_s3 + $0x8] sm:$0xff] %vm287_vm2, %v303_v50 }
 0x1b9 PF: > { %p15_p6 = scmp.ge.s32.totalorder %s605_s24, 4   ;;  %s756_s12 = smov %s518_s13 }
 0x1ba   : > { %s757_s13 = smov %s522_s14  ;;  %s758_s14 = smov %s622_s5 }
 0x1bb   : > { %s759_s15 = smov %s605_s24  ;;  %17 = sbr.rel (!%p15_p6) target bundleno = 4 (0x4), region = 80 }
 0x1c0   :  { %323 = vsyncpa [#allocation3], 1 }
 0x1c1   :  { %325 = vsyncpa [#allocation3 + $0x1], 1 }
 0x1c2   :  { %326 = vsyncpa [#allocation5], 1 }

</bundles_post_ra>
